<compile_context>
chip_gen: v7x
topology: tpu7x:2x2x1
jax: 0.10.0
libtpu: 0.0.40
codegen_flags: <defaults>
</compile_context>

<pallas_src>
import jax
import jax.numpy as jnp
import numpy as np
from jax import lax
from jax.experimental import pallas as pl
from jax.experimental.pallas import tpu as pltpu

REPARAM_OFFSET = 2.0 ** -18
PEDESTAL = REPARAM_OFFSET ** 2

# Below this channel count the (C,C) mix is done with unrolled VPU FMAs;
# at/above it we use the MXU matmul (keeps the VALU slot free).
_MXU_MIN_CHANNELS = 8


# ----------------------------------------------------------------------------
# NonNegativeParametrizer (compressai) — tiny parameter glue, plain JAX
# ----------------------------------------------------------------------------
def nonneg_init(x):
    return jnp.sqrt(jnp.maximum(x + PEDESTAL, PEDESTAL))


def nonneg_forward(x, minimum=0.0):
    bound = (float(minimum) + PEDESTAL) ** 0.5
    out = jnp.maximum(x, bound)          # LowerBound forward
    return out * out - PEDESTAL


# ----------------------------------------------------------------------------
# Tile sizing (generation-aware: v7x has 64 MiB VMEM vs 128 MiB on v5e/v6e)
# ----------------------------------------------------------------------------
def _vmem_capacity_bytes():
    try:
        return int(pltpu.get_tpu_info().vmem_capacity_bytes)
    except Exception:
        return 64 << 20  # conservative (v7x-sized) fallback


def _choose_vmem_limit():
    # v5e/v6e (128 MiB physical) -> 64 MiB scoped limit (raised above the
    # 16/32 MiB defaults); v7x (64 MiB physical) -> 32 MiB.
    return int(min(_vmem_capacity_bytes() // 2, 64 << 20))


def _sublane_multiple(itemsize):
    # f32 -> 8, bf16 -> 16, int8/fp8 -> 32 sublanes per tile.
    return max(8, 32 // max(int(itemsize), 1))


def _choose_tile_hw(n, hw, c, itemsize, vmem_limit_bytes):
    hw_ceil = -(-hw // 128) * 128
    c_pad = -(-c // _sublane_multiple(itemsize)) * _sublane_multiple(itemsize)
    c_pad_f32 = -(-c // 8) * 8
    # VMEM bytes per lane-column: double-buffered in + out tiles (input dtype,
    # sublane-padded) plus ~3 f32 temporaries (x^2 / norm / scaled result).
    per_col = 4 * c_pad * itemsize + 3 * c_pad_f32 * 4
    budget = int(vmem_limit_bytes * 0.6)
    max_cols_vmem = budget // max(per_col, 1)
    # Amortize the ~0.35 us per-grid-step cost: target ~4 MiB of x per step.
    target_cols = (4 << 20) // max(c * itemsize, 1)
    tile = min(max_cols_vmem, target_cols, hw_ceil)
    tile = max(128, (tile // 128) * 128)          # lane-dense (multiple of 128)
    # Megacore (v7x has 2 TensorCores): keep >= 2 grid steps when possible.
    while n * (-(-hw // tile)) < 2 and tile > 128:
        tile = max(128, ((tile // 2) // 128) * 128)
    return tile


# ----------------------------------------------------------------------------
# Pallas kernel factory:  norm = gamma @ x^2 + beta ;  y = x * rsqrt(norm)
# Operates on the native (N, C, HW) view; block = (squeezed N, C, tile_hw).
# Ragged HW handled by an in-kernel tail mask + Pallas' masked boundary store.
# ----------------------------------------------------------------------------
def _make_gdn_pallas(n, c, hw, tile_hw, dtype, inverse, vmem_limit_bytes):
    use_mxu = c >= _MXU_MIN_CHANNELS
    ragged = (hw % tile_hw) != 0
    bf16_scale = jnp.dtype(dtype) == jnp.dtype(jnp.bfloat16)

    def kernel(x_ref, gamma_ref, beta_ref, o_ref):
        x = x_ref[...]                                   # (C, tile_hw), input dtype
        if ragged:
            # Zero the out-of-range tail lanes of the last block so
            # norm = beta > 0 there and rsqrt stays finite; the store of the
            # boundary block is masked by Pallas anyway.
            j = pl.program_id(1)
            col = lax.broadcasted_iota(jnp.int32, (c, tile_hw), 1)
            valid = (col + j * tile_hw) < hw
            x = jnp.where(valid, x, jnp.zeros((), x.dtype))

        beta = beta_ref[...].astype(jnp.float32)         # (C, 1)

        if use_mxu:
            # Operands stay in the input dtype (bf16 stays bf16 on v6e/v7x;
            # f32 uses the default multi-pass MXU lowering), f32 accumulation.
            # gamma was pre-cast in the wrapper -> no per-step cast here.
            x2 = x * x
            norm = jnp.dot(gamma_ref[...], x2,
                           preferred_element_type=jnp.float32)
            norm = norm + beta
        else:
            # Small C: VPU broadcast-MAC over channels (MXU would be ~empty).
            xf = x.astype(jnp.float32)
            x2 = xf * xf
            gamma = gamma_ref[...]                       # (C, C) f32
            norm = jnp.broadcast_to(beta, (c, tile_hw))
            for k in range(c):                           # static unroll, C < 8
                norm = norm + gamma[:, k:k + 1] * x2[k:k + 1, :]

        norm = jnp.sqrt(norm) if inverse else lax.rsqrt(norm)

        if bf16_scale:
            # bf16 VPU on v6e/v7x: halve VALU work / vreg footprint.
            # (Mosaic widens to f32 on v5e, still correct.)
            o_ref[...] = (x * norm.astype(x.dtype)).astype(o_ref.dtype)
        else:
            o_ref[...] = (x.astype(jnp.float32) * norm).astype(o_ref.dtype)

    grid = (n, pl.cdiv(hw, tile_hw))
    itemsize = jnp.dtype(dtype).itemsize
    m = n * hw
    cost = pl.CostEstimate(
        flops=2 * m * c * c,
        transcendentals=m * c,
        bytes_accessed=2 * m * c * itemsize + 4 * c * c + 4 * c,
    )

    return pl.pallas_call(
        kernel,
        out_shape=jax.ShapeDtypeStruct((n, c, hw), dtype),
        grid_spec=pltpu.PrefetchScalarGridSpec(
            num_scalar_prefetch=0,
            grid=grid,
            in_specs=[
                # x tile: batch dim squeezed, full C on sublanes, HW tile on lanes
                pl.BlockSpec((None, c, tile_hw), lambda b, j: (b, 0, j)),
                pl.BlockSpec((c, c), lambda b, j: (0, 0)),    # gamma (resident)
                pl.BlockSpec((c, 1), lambda b, j: (0, 0)),    # beta  (resident)
            ],
            out_specs=pl.BlockSpec((None, c, tile_hw), lambda b, j: (b, 0, j)),
        ),
        compiler_params=pltpu.CompilerParams(
            dimension_semantics=("parallel", "parallel"),
            vmem_limit_bytes=vmem_limit_bytes,
        ),
        cost_estimate=cost,
    )


# ----------------------------------------------------------------------------
# SwitchableGDN2d
# ----------------------------------------------------------------------------
class SwitchableGDN2dPallas:
    def __init__(self, num_features_list, inverse=False, key=None):
        self.num_features_list = list(num_features_list)
        self.inverse = bool(inverse)
        if key is None:
            key = jax.random.PRNGKey(0)
        self.params = []
        for c in self.num_features_list:
            key, k1 = jax.random.split(key)
            # compressai GDN init is beta = ones(C), gamma = 0.1 * eye(C); a
            # small non-negative perturbation is added here (test-only) so the
            # cross-channel mix is actually exercised.
            beta_raw = jnp.ones((c,), jnp.float32)
            gamma_raw = 0.1 * jnp.eye(c, dtype=jnp.float32) + \
                0.01 * jnp.abs(jax.random.normal(k1, (c, c), jnp.float32))
            self.params.append((nonneg_init(beta_raw), nonneg_init(gamma_raw)))

    def effective_params(self, index_channel=0):
        beta_param, gamma_param = self.params[index_channel]
        beta = nonneg_forward(beta_param, minimum=1e-6)      # (C,)
        gamma = nonneg_forward(gamma_param, minimum=0.0)     # (C, C)
        return beta, gamma

    def __call__(self, x, index_channel=0):
        c = self.num_features_list[index_channel]
        n, cx, h, w = x.shape
        assert cx == c, f"input channels {cx} != gdn[{index_channel}] channels {c}"

        beta, gamma = self.effective_params(index_channel)

        # Native layout: (N, C, H, W) -> (N, C, HW). No transposes, no padding,
        # no post-kernel slicing (ragged HW handled inside the kernel).
        hw = h * w
        itemsize = jnp.dtype(x.dtype).itemsize
        vmem_limit = _choose_vmem_limit()
        tile_hw = _choose_tile_hw(n, hw, c, itemsize, vmem_limit)

        use_mxu = c >= _MXU_MIN_CHANNELS
        # Pre-cast gamma to the channel-mix operand dtype (no in-kernel casts).
        gamma_dtype = x.dtype if use_mxu else jnp.float32

        x_flat = x.reshape(n, c, hw)
        call = _make_gdn_pallas(n, c, hw, tile_hw, x.dtype,
                                self.inverse, vmem_limit)
        y_flat = call(x_flat,
                      gamma.astype(gamma_dtype),
                      beta.reshape(c, 1).astype(jnp.float32))
        return y_flat.reshape(n, c, h, w)


# ----------------------------------------------------------------------------
# pure-JAX reference (mirrors F.conv2d with 1x1 kernel on NCHW)
# ----------------------------------------------------------------------------
def gdn_reference(x, beta, gamma, inverse):
    xf = x.astype(jnp.float32)
    norm = jnp.einsum("ij,njhw->nihw", gamma, xf * xf) + beta[None, :, None, None]
    norm = jnp.sqrt(norm) if inverse else lax.rsqrt(norm)
    return xf * norm


if __name__ == "__main__":
    key = jax.random.PRNGKey(0)
    k_x, k_p, k_x2, k_p2, k_x3, k_p3 = jax.random.split(key, 6)

    # --- small C (VPU channel-mix path): batch=2, channels=4, spatial=16x16 ---
    num_features_list = [4, 8]
    x = jax.random.normal(k_x, (2, 4, 16, 16), jnp.float32)

    module = SwitchableGDN2dPallas(num_features_list, inverse=False, key=k_p)
    y = jax.block_until_ready(module(x, index_channel=0))
    beta_eff, gamma_eff = module.effective_params(0)
    y_ref = gdn_reference(x, beta_eff, gamma_eff, inverse=False)
    np.testing.assert_allclose(np.asarray(y), np.asarray(y_ref),
                               rtol=1e-5, atol=1e-5)

    # inverse (IGDN) branch
    module_inv = SwitchableGDN2dPallas(num_features_list, inverse=True, key=k_p)
    y_inv = jax.block_until_ready(module_inv(x, index_channel=0))
    beta_i, gamma_i = module_inv.effective_params(0)
    y_inv_ref = gdn_reference(x, beta_i, gamma_i, inverse=True)
    np.testing.assert_allclose(np.asarray(y_inv), np.asarray(y_inv_ref),
                               rtol=1e-5, atol=1e-5)

    # --- larger C (MXU path) + ragged HW (in-kernel tail mask, masked store) ---
    x_big = jax.random.normal(k_x2, (1, 64, 10, 12), jnp.float32)   # HW=120
    module_big = SwitchableGDN2dPallas([64], inverse=False, key=k_p2)
    y_big = jax.block_until_ready(module_big(x_big, index_channel=0))
    beta_b, gamma_b = module_big.effective_params(0)
    y_big_ref = gdn_reference(x_big, beta_b, gamma_b, inverse=False)
    # relaxed tolerance: MXU f32 matmul at default precision is multi-pass bf16
    np.testing.assert_allclose(np.asarray(y_big), np.asarray(y_big_ref),
                               rtol=5e-3, atol=5e-3)

    # --- bf16 input (bf16 operands on MXU + bf16 elementwise scaling) ---
    x_bf = jax.random.normal(k_x3, (2, 8, 16, 16), jnp.float32).astype(jnp.bfloat16)
    module_bf = SwitchableGDN2dPallas([8], inverse=False, key=k_p3)
    y_bf = jax.block_until_ready(module_bf(x_bf, index_channel=0))
    beta_f, gamma_f = module_bf.effective_params(0)
    y_bf_ref = gdn_reference(x_bf, beta_f, gamma_f, inverse=False)
    np.testing.assert_allclose(np.asarray(y_bf, dtype=np.float32),
                               np.asarray(y_bf_ref),
                               rtol=5e-2, atol=5e-2)

    print("KERNEL_OK")
</pallas_src>

<mosaic_0001>
module attributes {stable_mosaic.version = 11 : i64} {
  func.func @kernel(%arg0: i32, %arg1: i32, %arg2: memref<1x4x256xf32, #tpu.memory_space<vmem>>, %arg3: memref<4x4xf32, #tpu.memory_space<vmem>>, %arg4: memref<4x1xf32, #tpu.memory_space<vmem>>, %arg5: memref<1x4x256xf32, #tpu.memory_space<vmem>>) attributes {dimension_semantics = [#tpu.dimension_semantics<parallel>, #tpu.dimension_semantics<parallel>], iteration_bounds = array<i64: 2, 1>, scalar_prefetch = 0 : i64, scratch_operands = 0 : i64, tpu.core_type = #tpu.core_type<tc>, window_params = [{transform_indices = @transform_0, window_bounds = array<i64: 1, 4, 256>}, {pipeline_mode = #tpu.pipeline_mode<synchronous>, transform_indices = @transform_1, window_bounds = array<i64: 4, 4>}, {pipeline_mode = #tpu.pipeline_mode<synchronous>, transform_indices = @transform_2, window_bounds = array<i64: 4, 1>}, {transform_indices = @transform_3, window_bounds = array<i64: 1, 4, 256>}]} {
    %c0 = arith.constant 0 : index
    %c0_0 = arith.constant 0 : index
    %c0_1 = arith.constant 0 : index
    %0 = vector.load %arg2[%c0, %c0_0, %c0_1] : memref<1x4x256xf32, #tpu.memory_space<vmem>>, vector<1x4x256xf32>
    %1 = vector.shape_cast %0 : vector<1x4x256xf32> to vector<4x256xf32>
    %c0_2 = arith.constant 0 : index
    %c0_3 = arith.constant 0 : index
    %2 = vector.load %arg4[%c0_2, %c0_3] : memref<4x1xf32, #tpu.memory_space<vmem>>, vector<4x1xf32>
    %3 = arith.mulf %1, %1 : vector<4x256xf32>
    %c0_4 = arith.constant 0 : index
    %c0_5 = arith.constant 0 : index
    %4 = vector.load %arg3[%c0_4, %c0_5] : memref<4x4xf32, #tpu.memory_space<vmem>>, vector<4x4xf32>
    %5 = vector.shape_cast %2 : vector<4x1xf32> to vector<4x1xf32>
    %6 = vector.broadcast %5 : vector<4x1xf32> to vector<4x256xf32>
    %7 = vector.extract_strided_slice %4 {offsets = [0, 0], sizes = [4, 1], strides = [1, 1]} : vector<4x4xf32> to vector<4x1xf32>
    %8 = vector.extract_strided_slice %3 {offsets = [0, 0], sizes = [1, 256], strides = [1, 1]} : vector<4x256xf32> to vector<1x256xf32>
    %9 = vector.broadcast %7 : vector<4x1xf32> to vector<4x256xf32>
    %10 = vector.broadcast %8 : vector<1x256xf32> to vector<4x256xf32>
    %11 = arith.mulf %9, %10 : vector<4x256xf32>
    %12 = arith.addf %6, %11 : vector<4x256xf32>
    %13 = vector.extract_strided_slice %4 {offsets = [0, 1], sizes = [4, 1], strides = [1, 1]} : vector<4x4xf32> to vector<4x1xf32>
    %14 = vector.extract_strided_slice %3 {offsets = [1, 0], sizes = [1, 256], strides = [1, 1]} : vector<4x256xf32> to vector<1x256xf32>
    %15 = vector.broadcast %13 : vector<4x1xf32> to vector<4x256xf32>
    %16 = vector.broadcast %14 : vector<1x256xf32> to vector<4x256xf32>
    %17 = arith.mulf %15, %16 : vector<4x256xf32>
    %18 = arith.addf %12, %17 : vector<4x256xf32>
    %19 = vector.extract_strided_slice %4 {offsets = [0, 2], sizes = [4, 1], strides = [1, 1]} : vector<4x4xf32> to vector<4x1xf32>
    %20 = vector.extract_strided_slice %3 {offsets = [2, 0], sizes = [1, 256], strides = [1, 1]} : vector<4x256xf32> to vector<1x256xf32>
    %21 = vector.broadcast %19 : vector<4x1xf32> to vector<4x256xf32>
    %22 = vector.broadcast %20 : vector<1x256xf32> to vector<4x256xf32>
    %23 = arith.mulf %21, %22 : vector<4x256xf32>
    %24 = arith.addf %18, %23 : vector<4x256xf32>
    %25 = vector.extract_strided_slice %4 {offsets = [0, 3], sizes = [4, 1], strides = [1, 1]} : vector<4x4xf32> to vector<4x1xf32>
    %26 = vector.extract_strided_slice %3 {offsets = [3, 0], sizes = [1, 256], strides = [1, 1]} : vector<4x256xf32> to vector<1x256xf32>
    %27 = vector.broadcast %25 : vector<4x1xf32> to vector<4x256xf32>
    %28 = vector.broadcast %26 : vector<1x256xf32> to vector<4x256xf32>
    %29 = arith.mulf %27, %28 : vector<4x256xf32>
    %30 = arith.addf %24, %29 : vector<4x256xf32>
    %31 = math.rsqrt %30 : vector<4x256xf32>
    %32 = arith.mulf %1, %31 : vector<4x256xf32>
    %c0_6 = arith.constant 0 : index
    %c0_7 = arith.constant 0 : index
    %c0_8 = arith.constant 0 : index
    %33 = vector.load %arg5[%c0_6, %c0_7, %c0_8] : memref<1x4x256xf32, #tpu.memory_space<vmem>>, vector<1x4x256xf32>
    %34 = vector.shape_cast %33 : vector<1x4x256xf32> to vector<4x256xf32>
    %35 = vector.shape_cast %32 : vector<4x256xf32> to vector<1x4x256xf32>
    tpu.vector_store %arg5[%c0_6, %c0_7, %c0_8], %35 {strides = array<i32>} : memref<1x4x256xf32, #tpu.memory_space<vmem>>, vector<1x4x256xf32>,
    return
  }
  func.func @transform_0(%arg0: i32, %arg1: i32) -> (i32, i32, i32) {
    %c0_i32 = arith.constant 0 : i32
    %c0_i32_0 = arith.constant 0 : i32
    return %arg0, %c0_i32, %arg1 : i32, i32, i32
  }
  func.func @transform_1(%arg0: i32, %arg1: i32) -> (i32, i32) {
    %c0_i32 = arith.constant 0 : i32
    %c0_i32_0 = arith.constant 0 : i32
    %c0_i32_1 = arith.constant 0 : i32
    return %c0_i32, %c0_i32_0 : i32, i32
  }
  func.func @transform_2(%arg0: i32, %arg1: i32) -> (i32, i32) {
    %c0_i32 = arith.constant 0 : i32
    %c0_i32_0 = arith.constant 0 : i32
    %c0_i32_1 = arith.constant 0 : i32
    return %c0_i32, %c0_i32_0 : i32, i32
  }
  func.func @transform_3(%arg0: i32, %arg1: i32) -> (i32, i32, i32) {
    %c0_i32 = arith.constant 0 : i32
    %c0_i32_0 = arith.constant 0 : i32
    return %arg0, %c0_i32, %arg1 : i32, i32, i32
  }
}

</mosaic_0001>

<bundles_post_ra>
// kernel: tpu_custom_call.1
= control target key start
LH: loop header
LB: loop body
LE: loop exit
PB: predicated region body
PF: predicated region fallthrough
CT: control target
= control target key end

     0   :  { %8 = vsyncpa [#allocation3], 0  ;;  %s844_s0 = inlined_call_operand.hbm [shape: f32[2,4,256], index: 0, kind: input, shape index: {}]   ;;  %s845_s1 = inlined_call_operand.vmem [shape: f32[4,4], index: 1, kind: input, shape index: {}]   ;;  %s846_s2 = inlined_call_operand.vmem [shape: f32[4,1], index: 2, kind: input, shape index: {}]   ;;  %s847_s3 = inlined_call_operand.hbm [shape: f32[2,4,256], index: 3, kind: output, shape index: {}]  }
   0x1   :  { %10 = vsyncpa [#allocation3 + $0x1], 0 }
   0x2   :  { %11 = vsyncpa [#allocation4], 0 }
   0x3   :  { %13 = vsyncpa [#allocation4 + $0x1], 0  ;;  %s662_s12 = smov 0   ;;  %s664_s13 = smov 0  }
   0x4   :  { %s666_s14 = smov 0   ;;  %s668_s15 = smov 0  }
   0x5   :  { %s670_s16 = smov 0   ;;  %s672_s17 = smov 0  }
   0x6 LB: > { %s431_s18 = sadd.s32 4294967295, %s634_s17   ;;  %s432_s19 = sadd.s32 4294967294, %s634_s17   ;;  %s634_s17 = sphi %s672_s17, %s19_s17   ;;  %s630_s16 = sphi %s670_s16, %s863_s16   ;;  %s626_s15 = sphi %s668_s15, %s862_s15   ;;  %s622_s14 = sphi %s666_s14, %s861_s14   ;;  %s618_s13 = sphi %s664_s13, %s860_s13   ;;  %s614_s12 = sphi %s662_s12, %s859_s12  }
   0x7   : > { %s31_s20 = sadd.s32 1, %s630_s16  ;;  %s40_s21 = sadd.s32 1, %s622_s14 }
   0x8   : > { %p33_p0 = scmp.ge.s32.totalorder %s31_s20, 2  ;;  %p47_p1 = scmp.ne.s32.totalorder %s622_s14, %s618_s13 }
   0x9   : > { %p48_p2 = scmp.eq.s32.totalorder %s634_s17, 0  ;;  %p53_p3 = scmp.ne.s32.totalorder %s618_s13, %s614_s12 }
   0xa   : > { %s865_s20 = smov (%p33_p0, %s31_s20), 0  ;;  %p54_p5 = scmp.eq.s32.totalorder %s431_s18, 0 }
   0xb   : > { %p703_p4 = por %p48_p2, %p47_p1  ;;  %s35_s23 = ssub.s32 %s630_s16, %s865_s20 }
   0xc   : > { %p121_p6 = scmp.eq.s32.totalorder %s431_s18, 1  ;;  %p38_p7 = scmp.eq.s32.totalorder %s35_s23, 0 }
   0xd   : > { %p709_p8 = por %p54_p5, %p53_p3  ;;  %p127_p10 = scmp.eq.s32.totalorder %s432_s19, 1 }
   0xe   : > { %p713_p9 = por %p121_p6, %p47_p1  ;;  %p460_p13 = scmp.lt.s32.totalorder %s634_s17, 2 }
   0xf   : > { %s718_s26 = scalar_select %p38_p7, %s622_s14, %s40_s21  }
  0x10   : > { %s851_s25 = scalar_select %p713_p9, 1, 0 }
  0x11   : > { %p720_p11 = por %p127_p10, %p53_p3  ;;  %s153_s28 = sand.u32 1, %s622_s14  }
  0x12   : > { %s435_s29 = sshll.u32 %s153_s28, 3  ;;  %s446_s30 = sshll.u32 %s630_s16, 7 }
  0x13   : > { %s852_s27 = scalar_select %p720_p11, 1, 0 }
  0x14   : > { %s731_s6 = scalar_lea.hbm %s844_s0, %s446_s30  ;;  %s157_s7 = scalar_lea.vmem [#allocation2], %s435_s29 }
  0x15   : > { %s167_s8 = sshll.u32 %s157_s7, 4  ;;  %p737_p0 = pnand %p460_p13, %p703_p4  ;;  %s733_s8 = int_to_ptr.vmem [resolvable:$true] %s167_s8 }
  0x16   : > { %s154_s10 = scalar_lea.sflag [#allocation3], %s153_s28  ;;  %s522_s11 = scalar_lea.hbm %s731_s6, 128 }
  0x17   : > { %p523_p3 = scmp.ne.s32.totalorder %s731_s6, %s522_s11  ;;  %p524_p5 = pneg %p737_p0 }
  0x18   : > { %s527_s21 = scalar_lea.hbm %s844_s0, 256  ;;  %p528_p4 = scmp.lt.u32.totalorder %s731_s6, %s844_s0 }
  0x19   : > { %p525_p6 = pnand %p524_p5, %p523_p3  ;;  %p529_p10 = scmp.lt.u32.totalorder %s527_s21, %s522_s11 }
  0x1a   : > { %p531_p12 = scmp.lt.u32.totalorder %s522_s11, %s731_s6 }
  0x1b   : > { %p526_p7 = pneg %p525_p6  ;;  %p530_p13 = por %p529_p10, %p528_p4 }
  0x1d   : > { %p532_p1 = por %p531_p12, %p530_p13 }
  0x1f   : > { %p533_p2 = pnand %p532_p1, %p526_p7 }
  0x21   : > { %536 = shalt.err (!%p533_p2)
}
  0x22   : > { %s537_s28 = scalar_lea.vmem %s733_s8, 128  ;;  %s636_s29 = smov [#allocation2]  }
  0x23   : > { %p538_p3 = scmp.ne.s32.totalorder %s733_s8, %s537_s28  ;;  %s542_s30 = sshll.u32 %s636_s29, 4  ;;  %s543_s30 = int_to_ptr.vmem [resolvable:$false] %s542_s30 }
  0x24   : > { %s544_s4 = scalar_lea.vmem %s543_s30, 256  ;;  %p545_p9 = scmp.lt.s32.totalorder %s733_s8, %s543_s30 }
  0x25   : > { %p540_p6 = pnand %p538_p3, %p524_p5  ;;  %p546_p4 = scmp.lt.s32.totalorder %s544_s4, %s537_s28 }
  0x27   : > { %p541_p11 = pneg %p540_p6  ;;  %p547_p10 = por %p546_p4, %p545_p9 }
  0x29   : > { %p548_p12 = pnand %p547_p10, %p541_p11 }
  0x2b   : > { %551 = shalt.err (!%p548_p12)
}
  0x2c   : > { %455 = dma.hbm_to_vmem [thread:$0]  (!%p737_p0), %s731_s6, 128, %s733_s8, %s154_s10  }
  0x2d   : > { %p854_p1 = scmp.lt.s32.totalorder %s634_s17, 3  ;;  %p855_p2 = scmp.ge.s32.totalorder %s634_s17, 1 }
  0x2f   : > { %p173_p5 = pnand %p855_p2, %p854_p1 }
  0x30   : > { %s773_s5 = sand.u32 (!%p173_p5), 1, %s618_s13  }
  0x31   : > { %176 = sbr.rel (%p173_p5) target bundleno = 230 (0xe6), region = 32  ;;  %s439_s7 = sshll.u32 (!%p173_p5), %s773_s5, 3 }
  0x32   : > { %s179_s11 = scalar_lea.sflag (!%p173_p5), [#allocation3], %s773_s5  ;;  %s182_s9 = scalar_lea.vmem (!%p173_p5), [#allocation2], %s439_s7 }
  0x38   : > { %605 = dma.done.wait (%p709_p8), %s179_s11, 128  }
  0x39   : > { %607 = vsyncadd (%p709_p8), %s179_s11, 4294967168  ;;  %v637_v0 = vmov 0   ;;  %v638_v1 = vmov 1   ;;  %v210_v2 = vld [vmem:[%s845_s1] sm:$0xf]  ;;  %v639_v4 = vmov 2   ;;  %v222_v6 = vlaneseq }
  0x3a   : > { %514 = vset.pattern.permute.xlu0 %v637_v0  ;;  %515 = vset.pattern.permute.xlu1 %v638_v1  ;;  %v208_v3 = vld [vmem:[%s846_s2] sm:$0xf]  ;;  %v640_v5 = vmov 3   ;;  %s447_s24 = sshll.u32 %s626_s15, 7  ;;  %s204_s19 = scalar_lea.vmem [#allocation5], %s439_s7 }
  0x3b   : > { %218 = vperm.xlu0 %514, %v210_v2   ;;  %245 = vperm.xlu1 %515, %v210_v2   ;;  %v223_v7 = vshrl.u32 %v222_v6, 7  ;;  %v207_v8 = vld [vmem:[%s182_s9] sm:$0xff]  ;;  %s347_s21 = sshll.u32 %s204_s19, 4  ;;  %s795_s28 = scalar_lea.hbm %s847_s3, %s447_s24  ;;  %s797_s21 = int_to_ptr.vmem [resolvable:$true] %s347_s21 }
  0x3c   : > { %v209_v11 = vmul.f32 %v207_v8, %v207_v8  ;;  %s331_s29 = scalar_lea.sflag [#allocation4], %s773_s5  ;;  %s552_s30 = scalar_lea.vmem %s797_s21, 128 }
  0x3d   : > { %v224_v9 = vsub.s32 0, %v223_v7  ;;  %v228_v10 = vsub.s32 4, %v223_v7  ;;  %v250_v12 = vsub.s32 1, %v223_v7  ;;  %v254_v13 = vsub.s32 5, %v223_v7  ;;  %p553_p8 = scmp.ne.s32.totalorder %s797_s21, %s552_s30  ;;  %p856_p9 = scmp.ne.s32.totalorder %s851_s25, 0 }
  0x3e   : > { %v276_v14 = vsub.s32 2, %v223_v7  ;;  %v280_v15 = vsub.s32 6, %v223_v7  ;;  %v302_v22 = vsub.s32 3, %v223_v7  ;;  %v306_v23 = vsub.s32 7, %v223_v7  ;;  %s641_s15 = smov [#allocation5]  }
  0x3f   : > { %213 = vperm.xlu0 %514, %v208_v3   ;;  %516 = vset.pattern.permute.xlu1 %v639_v4  ;;  %v225_v16 = vrot.slane %v209_v11, %v224_v9  ;;  %v229_v17 = vrot.slane %v209_v11, %v228_v10  ;;  %v251_v18 = vrot.slane %v209_v11, %v250_v12  ;;  %p554_p11 = pnand %p553_p8, %p856_p9  ;;  %s556_s4 = sshll.u32 %s641_s15, 4  ;;  %s557_s4 = int_to_ptr.vmem [resolvable:$false] %s556_s4 }
  0x40   : > { %271 = vperm.xlu1 %516, %v210_v2   ;;  %v255_v19 = vrot.slane %v209_v11, %v254_v13  ;;  %v277_v20 = vrot.slane %v209_v11, %v276_v14  ;;  %v281_v21 = vrot.slane %v209_v11, %v280_v15  ;;  %v303_v32 = vrot.slane %v209_v11, %v302_v22  ;;  %s558_s7 = scalar_lea.vmem %s557_s4, 256  ;;  %p559_p7 = scmp.lt.s32.totalorder %s797_s21, %s557_s4 }
  0x41   : > { %v235_v24 = vrot.slane %v225_v16, %v224_v9  ;;  %v239_v25 = vrot.slane %v229_v17, %v224_v9  ;;  %v261_v28 = vrot.slane %v251_v18, %v250_v12  ;;  %v307_v33 = vrot.slane %v209_v11, %v306_v23  ;;  %p555_p0 = pneg %p554_p11  ;;  %p560_p13 = scmp.lt.s32.totalorder %s558_s7, %s552_s30 }
  0x42   : > { %v265_v29 = vrot.slane %v255_v19, %v250_v12  ;;  %v287_v30 = vrot.slane %v277_v20, %v276_v14  ;;  %v291_v31 = vrot.slane %v281_v21, %v276_v14  ;;  %v313_v44 = vrot.slane %v303_v32, %v302_v22 }
  0x43   : > { %517 = vset.pattern.permute.xlu0 %v640_v5  ;;  %v317_v45 = vrot.slane %v307_v33, %v302_v22  ;;  %p561_p3 = por %p560_p13, %p559_p7 }
  0x44   : > { %297 = vperm.xlu0 %517, %v210_v2  }
  0x45   : > { %p562_p6 = pnand %p561_p3, %p555_p0 }
  0xba   : > { %v219_v26 = vpop.permute.xlu0 %218  ;;  %v246_v27 = vpop.permute.xlu1 %245 }
  0xbb   : > { %v240_v34 = vmul.f32 %v235_v24, %v219_v26  ;;  %v241_v35 = vmul.f32 %v239_v25, %v219_v26  ;;  %v266_v37 = vmul.f32 %v261_v28, %v246_v27  ;;  %v267_v38 = vmul.f32 %v265_v29, %v246_v27 }
  0xbe   : > { %v214_v36 = vpop.permute.xlu0 %213 }
  0xbf   : > { %v242_v39 = vadd.f32 %v240_v34, %v214_v36  ;;  %v243_v40 = vadd.f32 %v241_v35, %v214_v36  ;;  %v272_v41 = vpop.permute.xlu1 %271 }
  0xc0   : > { %v292_v42 = vmul.f32 %v287_v30, %v272_v41  ;;  %v293_v43 = vmul.f32 %v291_v31, %v272_v41 }
  0xc1   : > { %v268_v46 = vadd.f32 %v266_v37, %v242_v39  ;;  %v269_v47 = vadd.f32 %v267_v38, %v243_v40 }
  0xc3   : > { %v294_v48 = vadd.f32 %v292_v42, %v268_v46  ;;  %v295_v49 = vadd.f32 %v293_v43, %v269_v47  ;;  %v298_v50 = vpop.permute.xlu0 %297 }
  0xc4   : > { %v318_v51 = vmul.f32 %v313_v44, %v298_v50  ;;  %v319_v52 = vmul.f32 %v317_v45, %v298_v50 }
  0xc6   : > { %v320_v53 = vadd.f32 %v318_v51, %v294_v48  ;;  %v321_v54 = vadd.f32 %v319_v52, %v295_v49 }
  0xc8   : > { %518 = vrsqrt.f32 %v320_v53 }
  0xc9   : > { %520 = vrsqrt.f32 %v321_v54 }
  0xd2   : > { %v519_v55 = vpop.eup %518 }
  0xd3   : > { %v521_v56 = vpop.eup %520 }
  0xd4   : > { %v326_v57 = vcombine.low %v519_v55, %v521_v56 }
  0xd6   : > { %v328_v58 = vmul.f32 %v326_v57, %v207_v8 }
  0xd8   : > { %329 = vst [vmem:[%s204_s19] sm:$0xff] %v328_v58 }
  0xd9   : > { %565 = shalt.err (!%p562_p6)
}
  0xda   : > { %s566_s5 = scalar_lea.hbm %s795_s28, 128  ;;  %s570_s6 = scalar_lea.hbm %s847_s3, 256 }
  0xdb   : > { %p567_p4 = scmp.ne.s32.totalorder %s795_s28, %s566_s5  ;;  %p571_p1 = scmp.lt.u32.totalorder %s795_s28, %s847_s3 }
  0xdc   : > { %p572_p2 = scmp.lt.u32.totalorder %s570_s6, %s566_s5  ;;  %p574_p8 = scmp.lt.u32.totalorder %s566_s5, %s795_s28 }
  0xdd   : > { %p568_p10 = pnand %p567_p4, %p856_p9 }
  0xde   : > { %p573_p5 = por %p572_p2, %p571_p1 }
  0xdf   : > { %p569_p12 = pneg %p568_p10 }
  0xe0   : > { %p575_p11 = por %p574_p8, %p573_p5 }
  0xe2   : > { %p576_p0 = pnand %p575_p11, %p569_p12 }
  0xe4   : > { %579 = shalt.err (!%p576_p0)
}
  0xe5   : > { %450 = dma.vmem_to_hbm [thread:$0]  (%p856_p9), %s797_s21, 128, %s795_s28, %s331_s29  }
  0xe6 PF: > { %s359_s18 = sand.u32 1, %s614_s12   ;;  %p857_p7 = scmp.ne.s32.totalorder %s852_s27, 0 }
  0xe7   : > { %p858_p13 = scmp.ge.s32.totalorder %s634_s17, 2  ;;  %s360_s24 = scalar_lea.sflag [#allocation4], %s359_s18 }
  0xe9   : > { %p457_p3 = pnand %p858_p13, %p857_p7 }
  0xeb   : > { %609 = dma.done.wait (!%p457_p3), %s360_s24, 128  }
  0xec   : > { %611 = vsyncadd (!%p457_p3), %s360_s24, 4294967168  ;;  %s19_s17 = sadd.s32 1, %s634_s17   ;;  %s859_s12 = smov %s618_s13 }
  0xed   : > { %p16_p6 = scmp.ge.s32.totalorder %s19_s17, 4   ;;  %s860_s13 = smov %s622_s14 }
  0xee   : > { %s861_s14 = smov %s718_s26  ;;  %s862_s15 = smov %s630_s16 }
  0xef   : > { %s863_s16 = smov %s865_s20  ;;  %18 = sbr.rel (!%p16_p6) target bundleno = 6 (0x6), region = 77 }
  0xf6   :  { %365 = vsyncpa [#allocation3], 1 }
  0xf7   :  { %367 = vsyncpa [#allocation3 + $0x1], 1 }
  0xf8   :  { %368 = vsyncpa [#allocation4], 1 }
  0xf9   :  { %370 = vsyncpa [#allocation4 + $0x1], 1 }

</bundles_post_ra>
